<compile_context>
chip_gen: v5e
topology: v5e:2x2
jax: 0.10.0
libtpu: 0.0.40
codegen_flags: <defaults>
</compile_context>

<pallas_src>
import jax
import jax.numpy as jnp
from jax.experimental import pallas as pl
from jax.experimental.pallas import tpu as pltpu

_LANES = 128
_SUBLANES = 8
_MAX_TILE_ROWS = 512          # 512 rows * 128 lanes = 65536 boxes per grid step
_SMALL_N_FALLBACK = 2048      # below this, plain XLA is faster than a kernel launch


def _round_up(x: int, m: int) -> int:
    return ((x + m - 1) // m) * m


def _giou_loss_kernel(packed_ref, out_ref):
    # packed_ref: (9, TR, 128) f32. rows 0-3 = pred x1,y1,x2,y2;
    #                              rows 4-7 = gt   x1,y1,x2,y2;
    #                              row  8   = weight (mask & 1/N or user weights).
    # out_ref:    (1, 8, 128) f32 per-tile partial sums (lane/sublane dense).
    px1 = packed_ref[0]
    py1 = packed_ref[1]
    px2 = jnp.maximum(px1, packed_ref[2])
    py2 = jnp.maximum(py1, packed_ref[3])
    tx1 = packed_ref[4]
    ty1 = packed_ref[5]
    tx2 = packed_ref[6]
    ty2 = packed_ref[7]
    w = packed_ref[8]

    pred_area = (px2 - px1) * (py2 - py1)
    target_area = (tx2 - tx1) * (ty2 - ty1)

    # intersection — clamped widths are exactly equivalent to the original
    # (mask = strict inequalities; otherwise area 0) but cost 2 max ops
    # instead of 2 cmps + and + select.
    x1i = jnp.maximum(px1, tx1)
    y1i = jnp.maximum(py1, ty1)
    x2i = jnp.minimum(px2, tx2)
    y2i = jnp.minimum(py2, ty2)
    area_i = jnp.maximum(x2i - x1i, 0.0) * jnp.maximum(y2i - y1i, 0.0)

    # enclosing box
    x1e = jnp.minimum(px1, tx1)
    y1e = jnp.minimum(py1, ty1)
    x2e = jnp.maximum(px2, tx2)
    y2e = jnp.maximum(py2, ty2)
    area_e = (x2e - x1e) * (y2e - y1e) + 1e-7
    area_u = pred_area + target_area - area_i + 1e-7

    # loss = 1 - (iou - (area_e - area_u)/area_e)
    #      = 2 - area_i/area_u - area_u/area_e
    #      = 2 - (area_i*area_e + area_u*area_u) / (area_u*area_e)   (one divide)
    loss = 2.0 - (area_i * area_e + area_u * area_u) / (area_u * area_e)

    lw = loss * w                                      # (TR, 128)
    tr = lw.shape[0]
    # Reduce the tile to a single (8,128) vreg with plain VALU adds
    # (no XLU cross-lane work, no per-step scalar store).
    out_ref[0] = jnp.sum(lw.reshape(tr // _SUBLANES, _SUBLANES, _LANES), axis=0)


@jax.jit
def _giou_weighted_sum_pallas(pred_boxes, gt_boxes, w_vec):
    """Weighted sum of per-box GIoU loss (loss_weight applied by the caller)."""
    n = pred_boxes.shape[0]
    rows = -(-n // _LANES)                                 # ceil(N / 128)
    tile_rows = min(_MAX_TILE_ROWS, _round_up(rows, _SUBLANES))
    rows_pad = _round_up(rows, tile_rows)
    n_pad = rows_pad * _LANES
    num_tiles = rows_pad // tile_rows

    def pack(b):                                           # (N,4) -> (4, R_pad, 128)
        bt = jnp.transpose(b.astype(jnp.float32))
        bt = jnp.pad(bt, ((0, 0), (0, n_pad - n)))
        return bt.reshape(4, rows_pad, _LANES)

    w_pad = jnp.pad(w_vec.astype(jnp.float32), (0, n_pad - n))
    w_pad = w_pad.reshape(1, rows_pad, _LANES)             # zero weight on padding

    packed = jnp.concatenate([pack(pred_boxes), pack(gt_boxes), w_pad], axis=0)

    partials = pl.pallas_call(
        _giou_loss_kernel,
        out_shape=jax.ShapeDtypeStruct((num_tiles, _SUBLANES, _LANES), jnp.float32),
        grid_spec=pltpu.PrefetchScalarGridSpec(
            num_scalar_prefetch=0,
            grid=(num_tiles,),
            in_specs=[pl.BlockSpec((9, tile_rows, _LANES), lambda i: (0, i, 0))],
            out_specs=pl.BlockSpec((1, _SUBLANES, _LANES), lambda i: (i, 0, 0)),
        ),
        compiler_params=pltpu.CompilerParams(
            dimension_semantics=("parallel",)),
    )(packed)

    return jnp.sum(partials)                               # tiny reduction in XLA


def _giou_loss_ref(pred_boxes, gt_boxes, weights=None, loss_weight: float = 2.0):
    """Pure-JAX reference mirroring the PyTorch module exactly."""
    px1, py1 = pred_boxes[:, 0], pred_boxes[:, 1]
    px2 = jnp.maximum(px1, pred_boxes[:, 2])
    py2 = jnp.maximum(py1, pred_boxes[:, 3])
    pred_area = (px2 - px1) * (py2 - py1)
    tx1, ty1, tx2, ty2 = (gt_boxes[:, 0], gt_boxes[:, 1],
                          gt_boxes[:, 2], gt_boxes[:, 3])
    target_area = (tx2 - tx1) * (ty2 - ty1)
    x1i, y1i = jnp.maximum(px1, tx1), jnp.maximum(py1, ty1)
    x2i, y2i = jnp.minimum(px2, tx2), jnp.minimum(py2, ty2)
    mask = (y2i > y1i) & (x2i > x1i)
    area_i = jnp.where(mask, (x2i - x1i) * (y2i - y1i), 0.0)
    x1e, y1e = jnp.minimum(px1, tx1), jnp.minimum(py1, ty1)
    x2e, y2e = jnp.maximum(px2, tx2), jnp.maximum(py2, ty2)
    area_e = (x2e - x1e) * (y2e - y1e) + 1e-7
    area_u = pred_area + target_area - area_i + 1e-7
    gious = area_i / area_u - (area_e - area_u) / area_e
    loss = 1.0 - gious
    if weights is None:
        return loss.mean() * loss_weight
    return (loss * weights).sum() * loss_weight


def giou_loss(pred_boxes, gt_boxes, weights=None, loss_weight: float = 2.0,
              force_pallas: bool = False):
    """Equivalent of GIOULoss.forward. pred/gt: (N,4); weights: optional (N,)."""
    n = pred_boxes.shape[0]
    if n < _SMALL_N_FALLBACK and not force_pallas:
        # Small-N fast path: launch/padding overhead would dominate the kernel.
        return _giou_loss_ref(pred_boxes, gt_boxes, weights, loss_weight)
    if weights is None:
        w_vec = jnp.full((n,), 1.0 / n, dtype=jnp.float32)   # mean reduction
    else:
        w_vec = weights.astype(jnp.float32)                  # weighted sum
    total = _giou_weighted_sum_pallas(pred_boxes, gt_boxes, w_vec)
    return total * jnp.float32(loss_weight)


def _make_boxes(key, n):
    kc, ks = jax.random.split(key)
    centers = jax.random.uniform(kc, (n, 2), jnp.float32, 2.0, 10.0)
    sizes = jax.random.uniform(ks, (n, 2), jnp.float32, 0.5, 4.0)
    return jnp.concatenate([centers, centers + sizes], axis=1)   # [x1,y1,x2,y2]


if __name__ == "__main__":
    key = jax.random.PRNGKey(0)
    k1, k2, k3, k4, k5, k6 = jax.random.split(key, 6)

    # --- small batch (fast path + forced Pallas path) ---
    n_small = 8
    pred_s = _make_boxes(k1, n_small)
    gt_s = _make_boxes(k2, n_small)
    w_s = jax.random.uniform(k3, (n_small,), jnp.float32, 0.0, 1.0)

    ref_mean_s = _giou_loss_ref(pred_s, gt_s, None, 2.0)
    ref_w_s = _giou_loss_ref(pred_s, gt_s, w_s, 2.0)

    out_fast = giou_loss(pred_s, gt_s, None, 2.0)                       # JAX fast path
    out_pallas_s = giou_loss(pred_s, gt_s, None, 2.0, force_pallas=True)
    out_pallas_sw = giou_loss(pred_s, gt_s, w_s, 2.0, force_pallas=True)
    jax.block_until_ready((out_fast, out_pallas_s, out_pallas_sw))

    assert jnp.allclose(out_fast, ref_mean_s, rtol=1e-5, atol=1e-5), (out_fast, ref_mean_s)
    assert jnp.allclose(out_pallas_s, ref_mean_s, rtol=1e-5, atol=1e-5), (out_pallas_s, ref_mean_s)
    assert jnp.allclose(out_pallas_sw, ref_w_s, rtol=1e-5, atol=1e-5), (out_pallas_sw, ref_w_s)

    # --- larger, non-multiple-of-128 batch (Pallas path, mean + weighted) ---
    n_big = 3000
    pred_b = _make_boxes(k4, n_big)
    gt_b = _make_boxes(k5, n_big)
    w_b = jax.random.uniform(k6, (n_big,), jnp.float32, 0.0, 1.0)

    out_mean_b = giou_loss(pred_b, gt_b, None, 2.0, force_pallas=True)
    out_w_b = giou_loss(pred_b, gt_b, w_b, 2.0, force_pallas=True)
    jax.block_until_ready((out_mean_b, out_w_b))

    ref_mean_b = _giou_loss_ref(pred_b, gt_b, None, 2.0)
    ref_w_b = _giou_loss_ref(pred_b, gt_b, w_b, 2.0)
    assert jnp.allclose(out_mean_b, ref_mean_b, rtol=1e-5, atol=1e-5), (out_mean_b, ref_mean_b)
    assert jnp.allclose(out_w_b, ref_w_b, rtol=1e-4, atol=1e-4), (out_w_b, ref_w_b)

    print("KERNEL_OK")
</pallas_src>

<mosaic_0001>
module attributes {stable_mosaic.version = 11 : i64} {
  func.func @_giou_loss_kernel(%arg0: i32, %arg1: memref<9x8x128xf32, #tpu.memory_space<vmem>>, %arg2: memref<1x8x128xf32, #tpu.memory_space<vmem>>) attributes {dimension_semantics = [#tpu.dimension_semantics<parallel>], iteration_bounds = array<i64: 1>, scalar_prefetch = 0 : i64, scratch_operands = 0 : i64, tpu.core_type = #tpu.core_type<tc>, window_params = [{transform_indices = @transform_0, window_bounds = array<i64: 9, 8, 128>}, {transform_indices = @transform_1, window_bounds = array<i64: 1, 8, 128>}]} {
    %c0 = arith.constant 0 : index
    %c0_0 = arith.constant 0 : index
    %c0_1 = arith.constant 0 : index
    %0 = vector.load %arg1[%c0, %c0_0, %c0_1] : memref<9x8x128xf32, #tpu.memory_space<vmem>>, vector<1x8x128xf32>
    %1 = vector.shape_cast %0 : vector<1x8x128xf32> to vector<8x128xf32>
    %c1 = arith.constant 1 : index
    %c0_2 = arith.constant 0 : index
    %c0_3 = arith.constant 0 : index
    %2 = vector.load %arg1[%c1, %c0_2, %c0_3] : memref<9x8x128xf32, #tpu.memory_space<vmem>>, vector<1x8x128xf32>
    %3 = vector.shape_cast %2 : vector<1x8x128xf32> to vector<8x128xf32>
    %c2 = arith.constant 2 : index
    %c0_4 = arith.constant 0 : index
    %c0_5 = arith.constant 0 : index
    %4 = vector.load %arg1[%c2, %c0_4, %c0_5] : memref<9x8x128xf32, #tpu.memory_space<vmem>>, vector<1x8x128xf32>
    %5 = vector.shape_cast %4 : vector<1x8x128xf32> to vector<8x128xf32>
    %6 = arith.maximumf %1, %5 : vector<8x128xf32>
    %c3 = arith.constant 3 : index
    %c0_6 = arith.constant 0 : index
    %c0_7 = arith.constant 0 : index
    %7 = vector.load %arg1[%c3, %c0_6, %c0_7] : memref<9x8x128xf32, #tpu.memory_space<vmem>>, vector<1x8x128xf32>
    %8 = vector.shape_cast %7 : vector<1x8x128xf32> to vector<8x128xf32>
    %9 = arith.maximumf %3, %8 : vector<8x128xf32>
    %c4 = arith.constant 4 : index
    %c0_8 = arith.constant 0 : index
    %c0_9 = arith.constant 0 : index
    %10 = vector.load %arg1[%c4, %c0_8, %c0_9] : memref<9x8x128xf32, #tpu.memory_space<vmem>>, vector<1x8x128xf32>
    %11 = vector.shape_cast %10 : vector<1x8x128xf32> to vector<8x128xf32>
    %c5 = arith.constant 5 : index
    %c0_10 = arith.constant 0 : index
    %c0_11 = arith.constant 0 : index
    %12 = vector.load %arg1[%c5, %c0_10, %c0_11] : memref<9x8x128xf32, #tpu.memory_space<vmem>>, vector<1x8x128xf32>
    %13 = vector.shape_cast %12 : vector<1x8x128xf32> to vector<8x128xf32>
    %c6 = arith.constant 6 : index
    %c0_12 = arith.constant 0 : index
    %c0_13 = arith.constant 0 : index
    %14 = vector.load %arg1[%c6, %c0_12, %c0_13] : memref<9x8x128xf32, #tpu.memory_space<vmem>>, vector<1x8x128xf32>
    %15 = vector.shape_cast %14 : vector<1x8x128xf32> to vector<8x128xf32>
    %c7 = arith.constant 7 : index
    %c0_14 = arith.constant 0 : index
    %c0_15 = arith.constant 0 : index
    %16 = vector.load %arg1[%c7, %c0_14, %c0_15] : memref<9x8x128xf32, #tpu.memory_space<vmem>>, vector<1x8x128xf32>
    %17 = vector.shape_cast %16 : vector<1x8x128xf32> to vector<8x128xf32>
    %c8 = arith.constant 8 : index
    %c0_16 = arith.constant 0 : index
    %c0_17 = arith.constant 0 : index
    %18 = vector.load %arg1[%c8, %c0_16, %c0_17] : memref<9x8x128xf32, #tpu.memory_space<vmem>>, vector<1x8x128xf32>
    %19 = vector.shape_cast %18 : vector<1x8x128xf32> to vector<8x128xf32>
    %20 = arith.subf %6, %1 : vector<8x128xf32>
    %21 = arith.subf %9, %3 : vector<8x128xf32>
    %22 = arith.mulf %20, %21 : vector<8x128xf32>
    %23 = arith.subf %15, %11 : vector<8x128xf32>
    %24 = arith.subf %17, %13 : vector<8x128xf32>
    %25 = arith.mulf %23, %24 : vector<8x128xf32>
    %26 = arith.maximumf %1, %11 : vector<8x128xf32>
    %27 = arith.maximumf %3, %13 : vector<8x128xf32>
    %28 = arith.minimumf %6, %15 : vector<8x128xf32>
    %29 = arith.minimumf %9, %17 : vector<8x128xf32>
    %30 = arith.subf %28, %26 : vector<8x128xf32>
    %cst = arith.constant 0.000000e+00 : f32
    %31 = vector.broadcast %cst : f32 to vector<8x128xf32>
    %32 = arith.maximumf %30, %31 : vector<8x128xf32>
    %33 = arith.subf %29, %27 : vector<8x128xf32>
    %cst_18 = arith.constant 0.000000e+00 : f32
    %34 = vector.broadcast %cst_18 : f32 to vector<8x128xf32>
    %35 = arith.maximumf %33, %34 : vector<8x128xf32>
    %36 = arith.mulf %32, %35 : vector<8x128xf32>
    %37 = arith.minimumf %1, %11 : vector<8x128xf32>
    %38 = arith.minimumf %3, %13 : vector<8x128xf32>
    %39 = arith.maximumf %6, %15 : vector<8x128xf32>
    %40 = arith.maximumf %9, %17 : vector<8x128xf32>
    %41 = arith.subf %39, %37 : vector<8x128xf32>
    %42 = arith.subf %40, %38 : vector<8x128xf32>
    %43 = arith.mulf %41, %42 : vector<8x128xf32>
    %cst_19 = arith.constant 1.000000e-07 : f32
    %44 = vector.broadcast %cst_19 : f32 to vector<8x128xf32>
    %45 = arith.addf %43, %44 : vector<8x128xf32>
    %46 = arith.addf %22, %25 : vector<8x128xf32>
    %47 = arith.subf %46, %36 : vector<8x128xf32>
    %cst_20 = arith.constant 1.000000e-07 : f32
    %48 = vector.broadcast %cst_20 : f32 to vector<8x128xf32>
    %49 = arith.addf %47, %48 : vector<8x128xf32>
    %50 = arith.mulf %36, %45 : vector<8x128xf32>
    %51 = arith.mulf %49, %49 : vector<8x128xf32>
    %52 = arith.addf %50, %51 : vector<8x128xf32>
    %53 = arith.mulf %49, %45 : vector<8x128xf32>
    %54 = arith.divf %52, %53 : vector<8x128xf32>
    %cst_21 = arith.constant 2.000000e+00 : f32
    %55 = vector.broadcast %cst_21 : f32 to vector<8x128xf32>
    %56 = arith.subf %55, %54 : vector<8x128xf32>
    %57 = arith.mulf %56, %19 : vector<8x128xf32>
    %58 = vector.shape_cast %57 : vector<8x128xf32> to vector<1x8x128xf32>
    %cst_22 = arith.constant dense<0.000000e+00> : vector<8x128xf32>
    %59 = vector.multi_reduction <add>, %58, %cst_22 [0] : vector<1x8x128xf32> to vector<8x128xf32>
    %c0_23 = arith.constant 0 : index
    %c0_24 = arith.constant 0 : index
    %c0_25 = arith.constant 0 : index
    %60 = vector.load %arg2[%c0_23, %c0_24, %c0_25] : memref<1x8x128xf32, #tpu.memory_space<vmem>>, vector<1x8x128xf32>
    %61 = vector.shape_cast %60 : vector<1x8x128xf32> to vector<8x128xf32>
    %62 = vector.shape_cast %59 : vector<8x128xf32> to vector<1x8x128xf32>
    tpu.vector_store %arg2[%c0_23, %c0_24, %c0_25], %62 {strides = array<i32>} : memref<1x8x128xf32, #tpu.memory_space<vmem>>, vector<1x8x128xf32>,
    return
  }
  func.func @transform_0(%arg0: i32) -> (i32, i32, i32) {
    %c0_i32 = arith.constant 0 : i32
    %c0_i32_0 = arith.constant 0 : i32
    %c0_i32_1 = arith.constant 0 : i32
    return %c0_i32, %arg0, %c0_i32_0 : i32, i32, i32
  }
  func.func @transform_1(%arg0: i32) -> (i32, i32, i32) {
    %c0_i32 = arith.constant 0 : i32
    %c0_i32_0 = arith.constant 0 : i32
    %c0_i32_1 = arith.constant 0 : i32
    return %arg0, %c0_i32, %c0_i32_0 : i32, i32, i32
  }
}

</mosaic_0001>

<bundles_post_ra>
// kernel: _giou_weighted_sum_pallas.1
= control target key start
LH: loop header
LB: loop body
LE: loop exit
PB: predicated region body
PF: predicated region fallthrough
CT: control target
= control target key end

     0   :  { %s130_s0 = inlined_call_operand.vmem [shape: f32[9,8,128], index: 0, kind: input, shape index: {}]   ;;  %s131_s1 = inlined_call_operand.vmem [shape: f32[1,8,128], index: 1, kind: output, shape index: {}]  }
   0x1   :  { %v8_v0 = vld [vmem:[%s130_s0] sm:$0xff]  ;;  %v80_v1 = vld [vmem:[%s130_s0 + $0x8] sm:$0xff]  ;;  %v81_v2 = vld [vmem:[%s130_s0 + $0x10] sm:$0xff] }
   0x2   :  { %v13_v3 = vmax.f32 %v8_v0, %v81_v2  ;;  %v82_v4 = vld [vmem:[%s130_s0 + $0x18] sm:$0xff]  ;;  %v83_v5 = vld [vmem:[%s130_s0 + $0x20] sm:$0xff]  ;;  %v84_v6 = vld [vmem:[%s130_s0 + $0x28] sm:$0xff] }
   0x3   :  { %v16_v7 = vmax.f32 %v80_v1, %v82_v4  ;;  %v85_v8 = vld [vmem:[%s130_s0 + $0x30] sm:$0xff]  ;;  %v86_v9 = vld [vmem:[%s130_s0 + $0x38] sm:$0xff]  ;;  %v33_v10 = vmax.f32 %v8_v0, %v83_v5  ;;  %v34_v11 = vmax.f32 %v80_v1, %v84_v6  ;;  %v42_v12 = vmin.f32 %v8_v0, %v83_v5  ;;  %v87_v51 = vld [vmem:[%s130_s0 + $0x40] sm:$0xff] }
   0x4   :  { %v27_v13 = vsub.f32 %v13_v3, %v8_v0  ;;  %v30_v14 = vsub.f32 %v85_v8, %v83_v5  ;;  %v31_v15 = vsub.f32 %v86_v9, %v84_v6  ;;  %v35_v16 = vmin.f32 %v13_v3, %v85_v8 }
   0x5   :  { %v28_v17 = vsub.f32 %v16_v7, %v80_v1  ;;  %v36_v18 = vmin.f32 %v16_v7, %v86_v9  ;;  %v43_v19 = vmin.f32 %v80_v1, %v84_v6  ;;  %v44_v20 = vmax.f32 %v13_v3, %v85_v8 }
   0x6   :  { %v32_v21 = vmul.f32 %v31_v15, %v30_v14  ;;  %v37_v22 = vsub.f32 %v35_v16, %v33_v10  ;;  %v45_v23 = vmax.f32 %v16_v7, %v86_v9 }
   0x7   :  { %v29_v24 = vmul.f32 %v28_v17, %v27_v13  ;;  %v39_v25 = vsub.f32 %v36_v18, %v34_v11  ;;  %v46_v26 = vsub.f32 %v44_v20, %v42_v12 }
   0x8   :  { %v38_v27 = vmax.f32 %v37_v22, 0.0  ;;  %v47_v28 = vsub.f32 %v45_v23, %v43_v19 }
   0x9   :  { %v40_v29 = vmax.f32 %v39_v25, 0.0  ;;  %v50_v30 = vadd.f32 %v32_v21, %v29_v24 }
   0xa   :  { %v48_v31 = vmul.f32 %v47_v28, %v46_v26 }
   0xb   :  { %v41_v32 = vmul.f32 %v40_v29, %v38_v27 }
   0xc   :  { %v49_v33 = vadd.f32 1e-07, %v48_v31 }
   0xd   :  { %v51_v34 = vsub.f32 %v50_v30, %v41_v32 }
   0xe   :  { %v53_v39 = vmul.f32 %v49_v33, %v41_v32 }
   0xf   :  { %v52_v35 = vadd.f32 1e-07, %v51_v34 }
  0x11   :  { %v56_v36 = vmul.f32 %v52_v35, %v49_v33  ;;  %v54_v40 = vmul.f32 %v52_v35, %v52_v35 }
  0x13   :  { %88 = vrcp.f32 %v56_v36  ;;  %v68_v41 = vand.u32 2147483648, %v56_v36  ;;  %vm62_vm0 = vweird.f32 %v56_v36  ;;  %v66_v43 = vand.u32 2147483647, %v56_v36 }
  0x14   :  { %v55_v46 = vadd.f32 %v54_v40, %v53_v39 }
  0x15   :  { %v69_v45 = vor.u32 1.1754944e-38, %v68_v41  ;;  %vm67_vm3 = vcmp.eq.f32.partialorder %v66_v43, 8.507059e+37 }
  0x19   :  { %v89_v37 = vpop.eup %88 }
  0x1a   :  { %v58_v38 = vmul.f32 %v89_v37, %v56_v36  ;;  %vm63_vm1 = vweird.f32 %v89_v37 }
  0x1b   :  { %vm64_vm2 = vmor %vm62_vm0, %vm63_vm1 }
  0x1c   :  { %v59_v42 = vsub.f32 1.0, %v58_v38 }
  0x1e   :  { %v60_v44 = vmul.f32 %v89_v37, %v59_v42 }
  0x20   :  { %v61_v47 = vadd.f32 %v89_v37, %v60_v44 }
  0x22   :  { %v65_v48 = vsel %vm64_vm2, %v89_v37, %v61_v47 }
  0x23   :  { %v70_v49 = vsel %vm67_vm3, %v69_v45, %v65_v48 }
  0x24   :  { %v71_v50 = vmul.f32 %v70_v49, %v55_v46 }
  0x26   :  { %v72_v52 = vsub.f32 2.0, %v71_v50 }
  0x28   :  { %v73_v53 = vmul.f32 %v87_v51, %v72_v52 }
  0x2a   :  { %75 = vst [vmem:[%s131_s1] sm:$0xff] %v73_v53 }

</bundles_post_ra>
